<compile_context>
chip_gen: v5e
topology: v5e:2x2
jax: 0.10.0
libtpu: 0.0.40
codegen_flags: <defaults>
</compile_context>

<pallas_src>
import functools

import jax
import jax.numpy as jnp
from jax.experimental import pallas as pl
from jax.experimental.pallas import tpu as pltpu


def _round_up(x, m):
    return ((x + m - 1) // m) * m


def _segment_mean_kernel(batch_ref, x_ref, out_ref, counts_ref, *,
                         n_valid, num_graphs, need_mask):
    """One (F-tile, N-tile) grid step of the per-graph mean.

    batch_ref : [1, TN]  int32    graph id per node
    x_ref     : [TN, TF] f32/bf16 node-feature tile
    out_ref   : [B, TF]  f32      resident accumulator / final per-graph mean
    counts_ref: VMEM [B, 1] f32   running per-graph node counts
    """
    n = pl.program_id(1)                       # reduction axis (last, "arbitrary")

    @pl.when(n == 0)
    def _init():
        out_ref[...] = jnp.zeros_like(out_ref)
        counts_ref[...] = jnp.zeros_like(counts_ref)

    ids = batch_ref[...]                       # [1, TN] int32
    x = x_ref[...]                             # [TN, TF]
    tn = x.shape[0]

    if need_mask:
        # Last N tile is partial: zero garbage rows of x and push garbage ids
        # out of range so neither values nor counts are polluted.  The masks are
        # trivially true on full tiles, so this is applied unconditionally
        # (a few VPU selects, hidden under the DMA).
        base = n * tn
        col = jax.lax.broadcasted_iota(jnp.int32, ids.shape, 1) + base
        ids = jnp.where(col < n_valid, ids, num_graphs)
        row = jax.lax.broadcasted_iota(jnp.int32, (tn, 1), 0) + base
        x = jnp.where(row < n_valid, x, jnp.zeros_like(x))

    # One-hot assignment [B, TN]; the MXU turns the segment-sum into a matmul.
    graph_iota = jax.lax.broadcasted_iota(jnp.int32, (num_graphs, tn), 0)
    matches = graph_iota == ids                                   # [B, TN] bool
    one_hot = matches.astype(x.dtype)                             # bf16 or f32

    out_ref[...] += jnp.dot(one_hot, x, preferred_element_type=jnp.float32)
    counts_ref[...] += jnp.sum(matches.astype(jnp.float32), axis=-1, keepdims=True)

    @pl.when(n == pl.num_programs(1) - 1)
    def _finalize():
        # Divide only once per output tile.  approx=False keeps near-exact mean
        # parity with the reference (1-2 ulp from reciprocal*mul vs divide).
        inv = pl.reciprocal(jnp.maximum(counts_ref[...], 1.0), approx=False)
        out_ref[...] = out_ref[...] * inv


def _vmem_estimate(tn, tf, num_graphs, itemsize):
    """Rough steady-state VMEM footprint of one grid step (bytes)."""
    x_bufs = 2 * tn * tf * itemsize                       # double-buffered x tile
    batch_bufs = 2 * 8 * tn * 4                           # (1, TN) i32, 8-sublane pad
    out_bufs = 2 * _round_up(num_graphs, 8) * tf * 4      # resident f32 out block
    counts = _round_up(num_graphs, 8) * 128 * 4           # (B, 1) f32 scratch
    inter = num_graphs * tn * (4 + itemsize + 4)          # iota / one-hot / f32 mask
    return x_bufs + batch_bufs + out_bufs + counts + inter


# Below ~64 KiB of node features the per-kernel overhead dominates.
_PALLAS_MIN_ELEMS = 16384
# One-hot/MXU path scales with num_graphs; above this, fall back.
# TODO(synk): tile the graph axis (third grid dim) instead of falling back.
_MAX_GRAPHS_PALLAS = 512


def _global_mean_pool_ref(x, batch, num_graphs):
    x = x.astype(jnp.float32)
    seg_sum = jax.ops.segment_sum(x, batch, num_segments=num_graphs)
    seg_cnt = jax.ops.segment_sum(jnp.ones((x.shape[0], 1), jnp.float32),
                                  batch, num_segments=num_graphs)
    return seg_sum / jnp.maximum(seg_cnt, 1.0)


def global_mean_pool_pallas(x, batch, num_graphs, *,
                            target_step_bytes=8 << 20,
                            vmem_budget_bytes=24 << 20):
    """Pallas-backed global_mean_pool (scatter-mean over graph ids).

    x:     [N, F] node features (f32 or bf16 streamed natively; others cast to f32)
    batch: [N]    int graph id per node
    returns [num_graphs, F] float32
    """
    N, F = x.shape
    if num_graphs > _MAX_GRAPHS_PALLAS:
        return _global_mean_pool_ref(x, batch, num_graphs)

    if x.dtype != jnp.float32 and x.dtype != jnp.bfloat16:
        x = x.astype(jnp.float32)            # matches the module's .float()
    itemsize = x.dtype.itemsize
    batch2d = batch.reshape(1, N).astype(jnp.int32)

    # --- F tiling: lane dim must be a multiple of 128 or the full F.
    if F % 128 != 0:
        TF = F
    else:
        TF = min(F, 1024)
        # v7x megacore: when F is large enough, split into >=2 feature tiles
        # (keeps >= 512 contiguous lanes per DMA row).
        if pl.cdiv(F, TF) == 1 and F >= 1024:
            TF = _round_up(F // 2, 128)
    # TODO(synk): for small F on v7x, split the N reduction across the two
    # TensorCores (per-core partial sums + tiny combine) instead of leaving
    # one core idle when F // TF == 1.

    # --- N tiling: target ~8 MiB of x per grid step, shrink to fit the VMEM budget.
    TN = _round_up(max(target_step_bytes // max(TF * itemsize, 1), 128), 128)
    TN = min(TN, 8192, _round_up(max(N, 1), 128))
    while TN > 128 and _vmem_estimate(TN, TF, num_graphs, itemsize) > vmem_budget_bytes:
        TN -= 128

    est = _vmem_estimate(TN, TF, num_graphs, itemsize)
    vmem_limit = int(max(est + (4 << 20), 32 << 20))
    if vmem_limit > (56 << 20):
        # Can't fit sanely (e.g. huge F that is not a multiple of 128) -> plain JAX.
        return _global_mean_pool_ref(x, batch, num_graphs)

    f_steps = pl.cdiv(F, TF)
    n_steps = pl.cdiv(N, TN)
    need_mask = (N % TN) != 0

    kernel = functools.partial(_segment_mean_kernel,
                               n_valid=N, num_graphs=num_graphs,
                               need_mask=need_mask)

    cost = pl.CostEstimate(
        flops=2 * int(num_graphs) * int(N) * int(F),
        transcendentals=0,
        bytes_accessed=int(N) * int(F) * itemsize + int(N) * 4
                       + int(num_graphs) * int(F) * 4,
    )

    return pl.pallas_call(
        kernel,
        out_shape=jax.ShapeDtypeStruct((num_graphs, F), jnp.float32),
        grid=(f_steps, n_steps),          # F parallel (megacore), N reduction last
        in_specs=[
            pl.BlockSpec((1, TN), lambda f, n: (0, n)),    # graph-id tile
            pl.BlockSpec((TN, TF), lambda f, n: (n, f)),   # node-feature tile
        ],
        out_specs=pl.BlockSpec((num_graphs, TF), lambda f, n: (0, f)),
        scratch_shapes=[
            pltpu.VMEM((num_graphs, 1), jnp.float32),      # running counts
        ],
        compiler_params=pltpu.CompilerParams(
            dimension_semantics=("parallel", "arbitrary"),
            vmem_limit_bytes=vmem_limit),
        cost_estimate=cost,
    )(batch2d, x)


class ActorGN:
    """JAX mirror of the PyTorch ActorGN module (no trainable parameters)."""

    def __init__(self, action_dim, n_node_features, hidden_dim, activation_fn=None,
                 n_layers=1, propagation_steps=1, global_avg_pool=True):
        self.global_avg_pool = global_avg_pool
        self.action_dim = action_dim
        self.hidden_dim = hidden_dim
        self.propagation_steps = propagation_steps
        # activation_fn is constructed in the PyTorch __init__ but never used in forward.

    def node_update(self, x, edge_index, batch):
        # Identity, exactly as in the reference module.
        return x

    def __call__(self, x, edge_index, batch, num_graphs):
        # The reference does data.x.float(); the pooling path returns f32 via
        # f32 MXU accumulation (bf16 inputs are streamed natively, which is
        # numerically identical to casting first).
        x = self.node_update(x, edge_index, batch)
        if self.global_avg_pool:
            N, F = x.shape
            if N * F < _PALLAS_MIN_ELEMS or num_graphs > _MAX_GRAPHS_PALLAS:
                return _global_mean_pool_ref(x, batch, num_graphs)
            return global_mean_pool_pallas(x, batch, num_graphs)
        # Non-pooling branch: pure reshape (glue, no compute).
        return x.astype(jnp.float32).reshape(-1, self.action_dim, self.hidden_dim)


if __name__ == "__main__":
    key = jax.random.PRNGKey(0)
    k_x, k_e, k_x2 = jax.random.split(key, 3)

    # --- Test 1: f32 inputs, tile-aligned N (Pallas path) ------------------
    action_dim, hidden_dim = 4, 32
    N, F, B = 512, action_dim * hidden_dim, 4

    x = jax.random.normal(k_x, (N, F), dtype=jnp.float32)
    edge_index = jax.random.randint(k_e, (2, 1024), 0, N, dtype=jnp.int32)  # unused (identity)
    sizes = [200, 120, 112, 80]
    batch = jnp.concatenate(
        [jnp.full((s,), i, dtype=jnp.int32) for i, s in enumerate(sizes)])

    model = ActorGN(action_dim=action_dim, n_node_features=F, hidden_dim=hidden_dim,
                    global_avg_pool=True)
    out = jax.block_until_ready(model(x, edge_index, batch, num_graphs=B))
    ref = _global_mean_pool_ref(x, batch, B)
    assert out.shape == (B, F) and out.dtype == jnp.float32
    assert jnp.allclose(out, ref, atol=1e-5, rtol=1e-4), (
        float(jnp.max(jnp.abs(out - ref))))

    # --- Test 2: bf16 ingest + ragged N (in-kernel tail masking) -----------
    N2, F2, B2 = 500, 256, 3
    x2 = jax.random.normal(k_x2, (N2, F2), dtype=jnp.float32).astype(jnp.bfloat16)
    sizes2 = [211, 150, 139]
    batch2 = jnp.concatenate(
        [jnp.full((s,), i, dtype=jnp.int32) for i, s in enumerate(sizes2)])
    out2 = jax.block_until_ready(global_mean_pool_pallas(x2, batch2, B2))
    ref2 = _global_mean_pool_ref(x2, batch2, B2)
    assert out2.shape == (B2, F2) and out2.dtype == jnp.float32
    assert jnp.allclose(out2, ref2, atol=1e-3, rtol=1e-3), (
        float(jnp.max(jnp.abs(out2 - ref2))))

    # --- Non-pooling branch: pure reshape -----------------------------------
    model_np = ActorGN(action_dim=action_dim, n_node_features=F, hidden_dim=hidden_dim,
                       global_avg_pool=False)
    y = jax.block_until_ready(model_np(x, edge_index, batch, num_graphs=B))
    assert y.shape == (N, action_dim, hidden_dim)

    print("KERNEL_OK")
</pallas_src>

<mosaic_0001>
module attributes {stable_mosaic.version = 11 : i64} {
  func.func @_segment_mean_kernel(%arg0: i32, %arg1: i32, %arg2: memref<1x512xi32, #tpu.memory_space<vmem>>, %arg3: memref<512x128xf32, #tpu.memory_space<vmem>>, %arg4: memref<4x128xf32, #tpu.memory_space<vmem>>, %arg5: memref<4x1xf32, #tpu.memory_space<vmem>>) attributes {dimension_semantics = [#tpu.dimension_semantics<parallel>, #tpu.dimension_semantics<arbitrary>], iteration_bounds = array<i64: 1, 1>, scalar_prefetch = 0 : i64, scratch_operands = 1 : i64, tpu.core_type = #tpu.core_type<tc>, window_params = [{transform_indices = @transform_0, window_bounds = array<i64: 1, 512>}, {transform_indices = @transform_1, window_bounds = array<i64: 512, 128>}, {transform_indices = @transform_2, window_bounds = array<i64: 4, 128>}]} {
    %c0_i32 = arith.constant 0 : i32
    %0 = arith.cmpi eq, %arg1, %c0_i32 : i32
    %1 = arith.extui %0 : i1 to i32
    %c0_i32_0 = arith.constant 0 : i32
    %2 = arith.cmpi ne, %1, %c0_i32_0 : i32
    scf.if %2 {
      %cst_15 = arith.constant 0.000000e+00 : f32
      %24 = vector.broadcast %cst_15 : f32 to vector<4x128xf32>
      %c0_16 = arith.constant 0 : index
      %c0_17 = arith.constant 0 : index
      %25 = vector.load %arg4[%c0_16, %c0_17] : memref<4x128xf32, #tpu.memory_space<vmem>>, vector<4x128xf32>
      tpu.vector_store %arg4[%c0_16, %c0_17], %24 {strides = array<i32>} : memref<4x128xf32, #tpu.memory_space<vmem>>, vector<4x128xf32>,
      %cst_18 = arith.constant 0.000000e+00 : f32
      %26 = vector.broadcast %cst_18 : f32 to vector<4x1xf32>
      %c0_19 = arith.constant 0 : index
      %c0_20 = arith.constant 0 : index
      %27 = vector.load %arg5[%c0_19, %c0_20] : memref<4x1xf32, #tpu.memory_space<vmem>>, vector<4x1xf32>
      tpu.vector_store %arg5[%c0_19, %c0_20], %26 {strides = array<i32>} : memref<4x1xf32, #tpu.memory_space<vmem>>, vector<4x1xf32>,
    } else {
    }
    %c0 = arith.constant 0 : index
    %c0_1 = arith.constant 0 : index
    %3 = vector.load %arg2[%c0, %c0_1] : memref<1x512xi32, #tpu.memory_space<vmem>>, vector<1x512xi32>
    %c0_2 = arith.constant 0 : index
    %c0_3 = arith.constant 0 : index
    %4 = vector.load %arg3[%c0_2, %c0_3] : memref<512x128xf32, #tpu.memory_space<vmem>>, vector<512x128xf32>
    %5 = tpu.iota {dimensions = array<i32: 0>} : vector<4x512xi32>
    %6 = vector.broadcast %3 : vector<1x512xi32> to vector<4x512xi32>
    %7 = arith.cmpi eq, %5, %6 : vector<4x512xi32>
    %8 = arith.extui %7 : vector<4x512xi1> to vector<4x512xi32>
    %9 = arith.sitofp %8 : vector<4x512xi32> to vector<4x512xf32>
    %c0_4 = arith.constant 0 : index
    %c0_5 = arith.constant 0 : index
    %10 = vector.load %arg4[%c0_4, %c0_5] : memref<4x128xf32, #tpu.memory_space<vmem>>, vector<4x128xf32>
    %cst = arith.constant dense<0.000000e+00> : vector<4x128xf32>
    %11 = tpu.matmul %9, %4, %cst {dimension_numbers = #tpu.dot_dimension_numbers<[1], [0], [0], [1], [0, 0, 1, 1], [], []>} : vector<4x512xf32>, vector<512x128xf32>, vector<4x128xf32> -> vector<4x128xf32>
    %12 = arith.addf %10, %11 : vector<4x128xf32>
    %c0_6 = arith.constant 0 : index
    %c0_7 = arith.constant 0 : index
    %13 = vector.load %arg4[%c0_6, %c0_7] : memref<4x128xf32, #tpu.memory_space<vmem>>, vector<4x128xf32>
    tpu.vector_store %arg4[%c0_6, %c0_7], %12 {strides = array<i32>} : memref<4x128xf32, #tpu.memory_space<vmem>>, vector<4x128xf32>,
    %c0_8 = arith.constant 0 : index
    %c0_9 = arith.constant 0 : index
    %14 = vector.load %arg5[%c0_8, %c0_9] : memref<4x1xf32, #tpu.memory_space<vmem>>, vector<4x1xf32>
    %15 = arith.extui %7 : vector<4x512xi1> to vector<4x512xi32>
    %16 = arith.sitofp %15 : vector<4x512xi32> to vector<4x512xf32>
    %cst_10 = arith.constant dense<0.000000e+00> : vector<4xf32>
    %17 = vector.multi_reduction <add>, %16, %cst_10 [1] : vector<4x512xf32> to vector<4xf32>
    %18 = vector.shape_cast %17 : vector<4xf32> to vector<4x1xf32>
    %19 = arith.addf %14, %18 : vector<4x1xf32>
    %c0_11 = arith.constant 0 : index
    %c0_12 = arith.constant 0 : index
    %20 = vector.load %arg5[%c0_11, %c0_12] : memref<4x1xf32, #tpu.memory_space<vmem>>, vector<4x1xf32>
    tpu.vector_store %arg5[%c0_11, %c0_12], %19 {strides = array<i32>} : memref<4x1xf32, #tpu.memory_space<vmem>>, vector<4x1xf32>,
    %c0_i32_13 = arith.constant 0 : i32
    %21 = arith.cmpi eq, %arg1, %c0_i32_13 : i32
    %22 = arith.extui %21 : i1 to i32
    %c0_i32_14 = arith.constant 0 : i32
    %23 = arith.cmpi ne, %22, %c0_i32_14 : i32
    scf.if %23 {
      %c0_15 = arith.constant 0 : index
      %c0_16 = arith.constant 0 : index
      %24 = vector.load %arg5[%c0_15, %c0_16] : memref<4x1xf32, #tpu.memory_space<vmem>>, vector<4x1xf32>
      %cst_17 = arith.constant 1.000000e+00 : f32
      %25 = vector.broadcast %cst_17 : f32 to vector<4x1xf32>
      %26 = arith.maximumf %24, %25 : vector<4x1xf32>
      %27 = tpu.reciprocal %26 : vector<4x1xf32> -> vector<4x1xf32>
      %c0_18 = arith.constant 0 : index
      %c0_19 = arith.constant 0 : index
      %28 = vector.load %arg4[%c0_18, %c0_19] : memref<4x128xf32, #tpu.memory_space<vmem>>, vector<4x128xf32>
      %29 = vector.broadcast %27 : vector<4x1xf32> to vector<4x128xf32>
      %30 = arith.mulf %28, %29 : vector<4x128xf32>
      %c0_20 = arith.constant 0 : index
      %c0_21 = arith.constant 0 : index
      %31 = vector.load %arg4[%c0_20, %c0_21] : memref<4x128xf32, #tpu.memory_space<vmem>>, vector<4x128xf32>
      tpu.vector_store %arg4[%c0_20, %c0_21], %30 {strides = array<i32>} : memref<4x128xf32, #tpu.memory_space<vmem>>, vector<4x128xf32>,
    } else {
    }
    return
  }
  func.func @transform_0(%arg0: i32, %arg1: i32) -> (i32, i32) {
    %c0_i32 = arith.constant 0 : i32
    %c0_i32_0 = arith.constant 0 : i32
    return %c0_i32, %arg1 : i32, i32
  }
  func.func @transform_1(%arg0: i32, %arg1: i32) -> (i32, i32) {
    %c0_i32 = arith.constant 0 : i32
    return %arg1, %arg0 : i32, i32
  }
  func.func @transform_2(%arg0: i32, %arg1: i32) -> (i32, i32) {
    %c0_i32 = arith.constant 0 : i32
    %c0_i32_0 = arith.constant 0 : i32
    return %c0_i32, %arg0 : i32, i32
  }
}

</mosaic_0001>

<bundles_post_ra>
// kernel: tpu_custom_call.1
= control target key start
LH: loop header
LB: loop body
LE: loop exit
PB: predicated region body
PF: predicated region fallthrough
CT: control target
= control target key end

     0   :  { %7 = vsyncpa [#allocation4], 0  ;;  %s441_s0 = inlined_call_operand.hbm [shape: s32[1,512], index: 0, kind: input, shape index: {}]   ;;  %s442_s1 = inlined_call_operand.hbm [shape: f32[512,128], index: 1, kind: input, shape index: {}]   ;;  %s443_s2 = inlined_call_operand.hbm [shape: f32[4,128], index: 2, kind: output, shape index: {}]  }
   0x1   :  { %8 = vsyncpa [#allocation7], 0 }
   0x2   :  { %9 = vsyncpa [#allocation5], 0  ;;  %s15_s11 = sshll.u32 %s441_s0, 4  ;;  %s371_s12 = smov [#allocation3]   ;;  %s16_s11 = int_to_ptr.hbm [resolvable:$true] %s15_s11 }
   0x3   :  { %s17_s13 = sshll.u32 %s371_s12, 4  ;;  %s25_s16 = sshll.u32 %s442_s1, 4  ;;  %s18_s13 = int_to_ptr.vmem [resolvable:$true] %s17_s13  ;;  %s26_s16 = int_to_ptr.hbm [resolvable:$true] %s25_s16 }
   0x4   :  { %20 = dma.hbm_to_vmem [thread:$0]  %s16_s11, 64, %s18_s13, [#allocation4]  }
   0x5   :  { %s372_s17 = smov [#allocation6]   ;;  %s373_s19 = smov 128  }
   0x6   :  { %s27_s18 = sshll.u32 %s372_s17, 4  ;;  %s374_s20 = smov 8   ;;  %s28_s18 = int_to_ptr.vmem [resolvable:$true] %s27_s18 }
   0x7   :  { %33 = dma.hbm_to_vmem [thread:$0]  %s26_s16, 8192, %s28_s18, [#allocation7], %s373_s19, %s373_s19, %s374_s20  }
   0x8   :  { %365 = dma.done.wait [#allocation4], 64  }
   0x9   :  { %366 = vsyncadd [#allocation4], 4294967232 }
   0xa   :  { %367 = dma.done.wait [#allocation7], 8192  }
   0xb   :  { %368 = vsyncadd [#allocation7], 4294959104  ;;  %v375_v0 = vmov 0.0   ;;  %v114_v1 = vlaneseq  ;;  %v49_v3 = vld [vmem:[#allocation3] sm:$0xf]  ;;  %v96_v5 = vld [vmem:[#allocation6 + $0x170] sm:$0xff] }
   0xc   :  { %46 = vst [vmem:[#allocation8] sm:$0xf] %v375_v0  ;;  %v97_v4 = vld [vmem:[#allocation6 + $0x178] sm:$0xff]  ;;  %v116_v6 = vperm.slane %v49_v3, 0  ;;  %v117_v7 = vperm.slane %v49_v3, 1  ;;  %v118_v8 = vperm.slane %v49_v3, 2 }
   0xd   :  { %v115_v2 = vshrl.u32 %v114_v1, 7  ;;  %v119_v9 = vperm.slane %v49_v3, 3  ;;  %173 = vmatpush.msra.mxu2 %v97_v4  ;;  %v113_v10 = vld [vmem:[#allocation6 + $0x1f8] sm:$0xff]  ;;  %vm216_vm0 = vcmask 1043456   ;;  %v95_v13 = vld [vmem:[#allocation6 + $0x168] sm:$0xff]  ;;  %v112_v14 = vld [vmem:[#allocation6 + $0x1f0] sm:$0xff] }
   0xe   :  { %v65_v11 = vld [vmem:[#allocation6 + $0x78] sm:$0xff]  ;;  %193 = vmatpush.msra.mxu3 %v113_v10  ;;  %vm47_vm1 = vcmask 3072   ;;  %v64_v19 = vld [vmem:[#allocation6 + $0x70] sm:$0xff]  ;;  %v94_v21 = vld [vmem:[#allocation6 + $0x160] sm:$0xff]  ;;  %s378_s0 = smov [#allocation8]   ;;  %s263_s23 = sshll.u32 %s443_s2, 4  ;;  %s264_s23 = int_to_ptr.hbm [resolvable:$true] %s263_s23 }
   0xf   :  { %133 = vmatpush.msra.mxu0 %v65_v11  ;;  %v81_v12 = vld [vmem:[#allocation6 + $0xf8] sm:$0xff]  ;;  %vm400_vm2 = vcmp.eq.s32.totalorder %v115_v2, %v116_v6  ;;  %vm404_vm3 = vcmp.eq.s32.totalorder %v115_v2, %v117_v7  ;;  %vm408_vm4 = vcmp.eq.s32.totalorder %v115_v2, %v118_v8  ;;  %vm412_vm5 = vcmp.eq.s32.totalorder %v115_v2, %v119_v9  ;;  %v80_v20 = vld [vmem:[#allocation6 + $0xf0] sm:$0xff]  ;;  %v111_v26 = vld [vmem:[#allocation6 + $0x1e8] sm:$0xff]  ;;  %s261_s1 = sshll.u32 %s378_s0, 4  ;;  %s262_s1 = int_to_ptr.vmem [resolvable:$true] %s261_s1 }
  0x10   :  { %174 = vmatpush.msra.mxu2 %v96_v5  ;;  %v274_v22 = vsel %vm400_vm2, 1.0, %v375_v0  ;;  %v275_v23 = vsel %vm404_vm3, 1.0, %v375_v0  ;;  %v276_v24 = vsel %vm408_vm4, 1.0, %v375_v0  ;;  %v277_v25 = vsel %vm412_vm5, 1.0, %v375_v0  ;;  %153 = vmatpush.msra.mxu1 %v81_v12  ;;  %v63_v27 = vld [vmem:[#allocation6 + $0x68] sm:$0xff]  ;;  %v93_v33 = vld [vmem:[#allocation6 + $0x158] sm:$0xff] }
  0x11   :  { %194 = vmatpush.msra.mxu3 %v112_v14  ;;  %v217_v28 = vsel %vm216_vm0, %v274_v22, 0.0  ;;  %v218_v29 = vsel %vm216_vm0, %v275_v23, 0.0  ;;  %v220_v30 = vsel %vm216_vm0, %v276_v24, 0.0  ;;  %134 = vmatpush.msra.mxu0 %v64_v19  ;;  %v79_v31 = vld [vmem:[#allocation6 + $0xe8] sm:$0xff]  ;;  %v110_v34 = vld [vmem:[#allocation6 + $0x1e0] sm:$0xff]  ;;  %v222_v36 = vsel %vm216_vm0, %v277_v25, 0.0 }
  0x12   :  { %175 = vmatpush.msra.mxu2 %v95_v13  ;;  %v219_v32 = vadd.f32 %v218_v29, %v217_v28  ;;  %154 = vmatpush.msra.mxu1 %v80_v20  ;;  %v62_v35 = vld [vmem:[#allocation6 + $0x60] sm:$0xff]  ;;  %48 = vst.msk [vmem:[#allocation2] sm:$0xf] %vm47_vm1, %v375_v0  ;;  %v109_v38 = vld [vmem:[#allocation6 + $0x1d8] sm:$0xff]  ;;  %v92_v40 = vld [vmem:[#allocation6 + $0x150] sm:$0xff]  ;;  %v376_v25 = vmov 1.0  }
  0x13   :  { %195 = vmatpush.msra.mxu3 %v111_v26  ;;  %135 = vmatpush.msra.mxu0 %v63_v27  ;;  %v78_v37 = vld [vmem:[#allocation6 + $0xe0] sm:$0xff]  ;;  %v61_v41 = vld [vmem:[#allocation6 + $0x58] sm:$0xff]  ;;  %v91_v44 = vld [vmem:[#allocation6 + $0x148] sm:$0xff]  ;;  %v377_v28 = vmov 0  }
  0x14   :  { %176 = vmatpush.msra.mxu2 %v94_v21  ;;  %v221_v39 = vadd.f32 %v220_v30, %v219_v32  ;;  %155 = vmatpush.msra.mxu1 %v79_v31  ;;  %v77_v42 = vld [vmem:[#allocation6 + $0xd8] sm:$0xff]  ;;  %v108_v45 = vld [vmem:[#allocation6 + $0x1d0] sm:$0xff]  ;;  %v90_v48 = vld [vmem:[#allocation6 + $0x140] sm:$0xff] }
  0x15   :  { %196 = vmatpush.msra.mxu3 %v110_v34  ;;  %136 = vmatpush.msra.mxu0 %v62_v35  ;;  %v60_v46 = vld [vmem:[#allocation6 + $0x50] sm:$0xff]  ;;  %v107_v49 = vld [vmem:[#allocation6 + $0x1c8] sm:$0xff]  ;;  %v89_v52 = vld [vmem:[#allocation6 + $0x138] sm:$0xff] }
  0x16   :  { %177 = vmatpush.msra.mxu2 %v93_v33  ;;  %v223_v43 = vadd.f32 %v222_v36, %v221_v39  ;;  %156 = vmatpush.msra.mxu1 %v78_v37  ;;  %v76_v47 = vld [vmem:[#allocation6 + $0xd0] sm:$0xff]  ;;  %v59_v50 = vld [vmem:[#allocation6 + $0x48] sm:$0xff]  ;;  %v106_v53 = vld [vmem:[#allocation6 + $0x1c0] sm:$0xff] }
  0x17   :  { %197 = vmatpush.msra.mxu3 %v109_v38  ;;  %137 = vmatpush.msra.mxu0 %v61_v41  ;;  %v75_v51 = vld [vmem:[#allocation6 + $0xc8] sm:$0xff]  ;;  %v58_v54 = vld [vmem:[#allocation6 + $0x40] sm:$0xff]  ;;  %v88_v56 = vld [vmem:[#allocation6 + $0x130] sm:$0xff] }
  0x18   :  { %178 = vmatpush.msra.mxu2 %v92_v40  ;;  %224 = vadd.xlane.f32.xlu0 %v223_v43  ;;  %v74_v55 = vld [vmem:[#allocation6 + $0xc0] sm:$0xff]  ;;  %v105_v57 = vld [vmem:[#allocation6 + $0x1b8] sm:$0xff]  ;;  %v87_v60 = vld [vmem:[#allocation6 + $0x128] sm:$0xff] }
  0x19   :  { %157 = vmatpush.msra.mxu1 %v77_v42  ;;  %198 = vmatpush.msra.mxu3 %v108_v45  ;;  %v57_v58 = vld [vmem:[#allocation6 + $0x38] sm:$0xff]  ;;  %v104_v61 = vld [vmem:[#allocation6 + $0x1b0] sm:$0xff]  ;;  %v86_v0 = vld [vmem:[#allocation6 + $0x120] sm:$0xff] }
  0x1a   :  { %179 = vmatpush.msra.mxu2 %v91_v44  ;;  %138 = vmatpush.msra.mxu0 %v60_v46  ;;  %v73_v59 = vld [vmem:[#allocation6 + $0xb8] sm:$0xff]  ;;  %v56_v62 = vld [vmem:[#allocation6 + $0x30] sm:$0xff]  ;;  %v103_v1 = vld [vmem:[#allocation6 + $0x1a8] sm:$0xff] }
  0x1b   :  { %158 = vmatpush.msra.mxu1 %v76_v47  ;;  %199 = vmatpush.msra.mxu3 %v107_v49  ;;  %v72_v63 = vld [vmem:[#allocation6 + $0xb0] sm:$0xff]  ;;  %v55_v2 = vld [vmem:[#allocation6 + $0x28] sm:$0xff]  ;;  %v85_v4 = vld [vmem:[#allocation6 + $0x118] sm:$0xff] }
  0x1c   :  { %180 = vmatpush.msra.mxu2 %v90_v48  ;;  %139 = vmatpush.msra.mxu0 %v59_v50  ;;  %v71_v3 = vld [vmem:[#allocation6 + $0xa8] sm:$0xff]  ;;  %v102_v5 = vld [vmem:[#allocation6 + $0x1a0] sm:$0xff]  ;;  %v84_v8 = vld [vmem:[#allocation6 + $0x110] sm:$0xff] }
  0x1d   :  { %159 = vmatpush.msra.mxu1 %v75_v51  ;;  %200 = vmatpush.msra.mxu3 %v106_v53  ;;  %v54_v6 = vld [vmem:[#allocation6 + $0x20] sm:$0xff]  ;;  %v101_v9 = vld [vmem:[#allocation6 + $0x198] sm:$0xff]  ;;  %v83_v12 = vld [vmem:[#allocation6 + $0x108] sm:$0xff] }
  0x1e   :  { %181 = vmatpush.msra.mxu2 %v89_v52  ;;  %140 = vmatpush.msra.mxu0 %v58_v54  ;;  %v70_v7 = vld [vmem:[#allocation6 + $0xa0] sm:$0xff]  ;;  %v53_v10 = vld [vmem:[#allocation6 + $0x18] sm:$0xff]  ;;  %v100_v13 = vld [vmem:[#allocation6 + $0x190] sm:$0xff] }
  0x1f   :  { %160 = vmatpush.msra.mxu1 %v74_v55  ;;  %201 = vmatpush.msra.mxu3 %v105_v57  ;;  %v69_v11 = vld [vmem:[#allocation6 + $0x98] sm:$0xff]  ;;  %v52_v14 = vld [vmem:[#allocation6 + $0x10] sm:$0xff]  ;;  %v82_v20 = vld [vmem:[#allocation6 + $0x100] sm:$0xff] }
  0x20   :  { %182 = vmatpush.msra.mxu2 %v88_v56  ;;  %141 = vmatpush.msra.mxu0 %v57_v58  ;;  %v68_v19 = vld [vmem:[#allocation6 + $0x90] sm:$0xff]  ;;  %v99_v21 = vld [vmem:[#allocation6 + $0x188] sm:$0xff]  ;;  %v98_v24 = vld [vmem:[#allocation6 + $0x180] sm:$0xff] }
  0x21   :  { %161 = vmatpush.msra.mxu1 %v73_v59  ;;  %202 = vmatpush.msra.mxu3 %v104_v61  ;;  %v51_v22 = vld [vmem:[#allocation6 + $0x8] sm:$0xff]  ;;  %v50_v26 = vld [vmem:[#allocation6] sm:$0xff]  ;;  %v215_v17 = vld [vmem:[#allocation2] sm:$0xf] }
  0x22   :  { %183 = vmatpush.msra.mxu2 %v87_v60  ;;  %142 = vmatpush.msra.mxu0 %v56_v62  ;;  %v67_v23 = vld [vmem:[#allocation6 + $0x88] sm:$0xff]  ;;  %v66_v27 = vld [vmem:[#allocation6 + $0x80] sm:$0xff] }
  0x23   :  { %162 = vmatpush.msra.mxu1 %v72_v63  ;;  %203 = vmatpush.msra.mxu3 %v103_v1  ;;  %v132_v46 = vld [vmem:[#allocation8] sm:$0xf] }
  0x24   :  { %184 = vmatpush.msra.mxu2 %v86_v0  ;;  %143 = vmatpush.msra.mxu0 %v55_v2 }
  0x25   :  { %163 = vmatpush.msra.mxu1 %v71_v3  ;;  %204 = vmatpush.msra.mxu3 %v102_v5 }
  0x26   :  { %185 = vmatpush.msra.mxu2 %v85_v4  ;;  %144 = vmatpush.msra.mxu0 %v54_v6 }
  0x27   :  { %164 = vmatpush.msra.mxu1 %v70_v7  ;;  %205 = vmatpush.msra.mxu3 %v101_v9 }
  0x28   :  { %186 = vmatpush.msra.mxu2 %v84_v8  ;;  %145 = vmatpush.msra.mxu0 %v53_v10 }
  0x29   :  { %165 = vmatpush.msra.mxu1 %v69_v11  ;;  %206 = vmatpush.msra.mxu3 %v100_v13 }
  0x2a   :  { %187 = vmatpush.msra.mxu2 %v83_v12  ;;  %146 = vmatpush.msra.mxu0 %v52_v14 }
  0x2b   :  { %166 = vmatpush.msra.mxu1 %v68_v19  ;;  %207 = vmatpush.msra.mxu3 %v99_v21 }
  0x2c   :  { %188 = vmatpush.msra.mxu2 %v82_v20  ;;  %147 = vmatpush.msra.mxu0 %v51_v22 }
  0x2d   :  { %280 = vmatmul.msk.f32.vlgmr.msra.gmra.mxu2 %vm408_vm4, %v376_v25  ;;  %167 = vmatpush.msra.mxu1 %v67_v23 }
  0x2e   :  { %208 = vmatpush.msra.mxu3 %v98_v24  ;;  %148 = vmatpush.msra.mxu0 %v50_v26 }
  0x2f   :  { %281 = vmatmul.msk.f32.vlgmr.msra.gmra.mxu3 %vm412_vm5, %v376_v25  ;;  %168 = vmatpush.msra.mxu1 %v66_v27 }
  0x30   :  { %278 = vmatmul.msk.f32.vlgmr.msra.gmra.mxu0 %vm400_vm2, %v376_v25  ;;  %279 = vmatmul.msk.f32.vlgmr.msra.gmra.mxu1 %vm404_vm3, %v376_v25 }
  0x31   :  { %290 = vset.pattern.permute.xlu0 %v377_v28 }
  0x8b   :  { %v225_v29 = vpop.xlane.xlu0 %224 }
  0x8c   :  { %v226_v30 = vadd.f32 %v225_v29, %v215_v17 }
  0x8e   :  { %228 = vst.msk [vmem:[#allocation2] sm:$0xf] %vm47_vm1, %v226_v30 }
  0x95   :  { %v232_v31 = vld [vmem:[#allocation2] sm:$0xf] }
  0x96   :  { %v233_v18 = vmax.f32 %v232_v31, 1.0 }
  0x98   :  { %291 = vrcp.f32 %v233_v18  ;;  %v245_v35 = vand.u32 2147483648, %v233_v18  ;;  %v243_v15 = vand.u32 2147483647, %v233_v18  ;;  %vm239_vm7 = vweird.f32 %v233_v18 }
  0x9a   :  { %v246_v16 = vor.u32 1.1754944e-38, %v245_v35  ;;  %vm244_vm9 = vcmp.eq.f32.partialorder %v243_v15, 8.507059e+37 }
  0x9e   :  { %v292_v32 = vpop.eup %291 }
  0x9f   :  { %v235_v33 = vmul.f32 %v292_v32, %v233_v18  ;;  %vm240_vm6 = vweird.f32 %v292_v32 }
  0xa0   :  { %vm241_vm8 = vmor %vm239_vm7, %vm240_vm6 }
  0xa1   :  { %v236_v34 = vsub.f32 1.0, %v235_v33 }
  0xa3   :  { %v237_v36 = vmul.f32 %v292_v32, %v236_v34 }
  0xa5   :  { %v238_v37 = vadd.f32 %v292_v32, %v237_v36 }
  0xa7   :  { %v242_v38 = vsel %vm241_vm8, %v292_v32, %v238_v37 }
  0xa8   :  { %v247_v39 = vsel %vm244_vm9, %v246_v16, %v242_v38 }
  0xa9   :  { %251 = vperm.xlu0 %290, %v247_v39  }
  0xad   :  { %v150_v41 = vpop.f32.mrf.mxu0  ;;  %v170_v42 = vpop.f32.mrf.mxu1 }
  0xae   :  { %v171_v43 = vadd.f32 %v170_v42, %v150_v41 }
  0xb0   :  { %v190_v40 = vpop.f32.mrf.mxu2 }
  0xb1   :  { %v191_v45 = vadd.f32 %v190_v40, %v171_v43 }
  0xb2   :  { %v210_v44 = vpop.f32.mrf.mxu3 }
  0xb3   :  { %v211_v47 = vadd.f32 %v210_v44, %v191_v45 }
  0xb5   :  { %v213_v48 = vadd.f32 %v211_v47, %v132_v46 }
  0xb7   :  { %214 = vst [vmem:[#allocation8] sm:$0xf] %v213_v48 }
  0xbe   :  { %v248_v49 = vld [vmem:[#allocation8] sm:$0xf] }
 0x11b   :  { %v252_v50 = vpop.permute.xlu0 %251 }
 0x11c   :  { %v254_v51 = vmul.f32 %v252_v50, %v248_v49 }
 0x11e   :  { %255 = vst [vmem:[#allocation8] sm:$0xf] %v254_v51 }
 0x11f   :  { %266 = dma.vmem_to_hbm [thread:$0]  %s262_s1, 64, %s264_s23, [#allocation5]  }
 0x120   :  { %369 = dma.done.wait [#allocation5], 64  }
 0x121   :  { %370 = vsyncadd [#allocation5], 4294967232 }
 0x122   :  { %271 = vsyncpa [#allocation4], 1 }
 0x123   :  { %272 = vsyncpa [#allocation7], 1 }
 0x124   :  { %273 = vsyncpa [#allocation5], 1 }

</bundles_post_ra>
